<compile_context>
chip_gen: v6e
topology: v6e:2x2x1
jax: 0.10.0
libtpu: 0.0.40
codegen_flags: <defaults>
</compile_context>

<pallas_src>
import functools

import jax
import jax.numpy as jnp
from jax import lax
from jax.experimental import pallas as pl
from jax.experimental.pallas import tpu as pltpu

NEG_SLOPE = 0.01  # nn.LeakyReLU default negative_slope


def _conv1d_kernel(x_ref, w_ref, b_ref, o_ref, *, n_taps, l_tile):
    """Fused conv1d tile: one MXU matmul + bias + LeakyReLU.

    x_ref: (1, 1, R, C) input tile.
           stride==1 path: R = C_in,      C = L_tile + K - 1 (halo window),
                           n_taps = K  -> taps sliced in-kernel.
           stride>1  path: R = K*C_in,    C = L_tile (wrapper-built im2col),
                           n_taps = 1.
    w_ref: (C_out, K*C_in)  weights, rows ordered (k, c) -> k*C_in + c
    b_ref: (C_out, 1)       bias
    o_ref: (1, C_out, L_tile) output tile (NCL layout, L on lanes)
    """
    x = x_ref[0, 0]                                      # (R, C)
    if n_taps == 1:
        xcol = x                                         # already (K*C_in, L_tile)
    else:
        # Build the fused im2col matrix (K*C_in, L_tile) from K shifted windows.
        xcol = jnp.concatenate(
            [x[:, k:k + l_tile] for k in range(n_taps)], axis=0)

    # Single MXU push, f32 accumulation.
    y = jnp.dot(w_ref[...], xcol, preferred_element_type=jnp.float32)  # (C_out, L_tile)

    # Fused epilogue in f32: bias + LeakyReLU, then one downcast/store.
    y = y + b_ref[...].astype(jnp.float32)
    # Dropout(p=drop_rate): identity in eval mode / p=0 (module default).
    # TODO(synk): training-mode dropout (pltpu.prng_*) not implemented.
    y = jnp.where(y >= 0, y, NEG_SLOPE * y)
    o_ref[0] = y.astype(o_ref.dtype)


def _pick_l_tile(l_out):
    """Lane-dense L tile: multiple of 128 if possible, else the full length."""
    for cand in (512, 256, 128):
        if l_out % cand == 0:
            return cand
    return l_out


def conv_layer_forward(x, weight, bias, *, stride):
    """x: (N, C_in, L) NCL. weight: (C_out, C_in, K). bias: (C_out,).
    Returns (N, C_out, L_out) NCL, matching PyTorch
    Conv1d(padding=(K-1)//2) + Dropout(p=0) + LeakyReLU."""
    n, c_in, length = x.shape
    c_out, c_in_w, k = weight.shape
    assert c_in_w == c_in
    pad = (k - 1) // 2
    l_out = (length + 2 * pad - k) // stride + 1

    l_tile = _pick_l_tile(l_out)
    t = l_out // l_tile

    # ---- wrapper glue (plain JAX): pad length, build per-tile input blocks ----
    x_pad = jnp.pad(x, ((0, 0), (0, 0), (pad, pad)))         # (N, C_in, L + 2p), NCL

    if stride == 1:
        # Low-traffic path: pass the padded input (with a K-1 halo per tile);
        # the K tap windows are formed inside the kernel.
        n_taps = k
        lw = l_tile + k - 1
        if t == 1:
            x_tiles = x_pad[:, None, :, :lw]                 # (N, 1, C_in, Lw)
        else:
            x_tiles = jnp.stack(
                [x_pad[:, :, ti * l_tile: ti * l_tile + lw] for ti in range(t)],
                axis=1)                                      # (N, T, C_in, Lw)
    else:
        # stride > 1: build the fused im2col in the wrapper (rows ordered k*C_in + c).
        n_taps = 1
        span = (l_out - 1) * stride + 1
        xim = jnp.concatenate(
            [x_pad[:, :, kk: kk + span: stride] for kk in range(k)],
            axis=1)                                          # (N, K*C_in, L_out)
        if t == 1:
            x_tiles = xim[:, None]                           # (N, 1, K*C_in, L_out)
        else:
            x_tiles = xim.reshape(n, k * c_in, t, l_tile).transpose(0, 2, 1, 3)

    # Weight reshaped for the fused contraction: (C_out, K*C_in), row order (k, c).
    w2 = jnp.transpose(weight, (0, 2, 1)).reshape(c_out, k * c_in)
    b2 = bias.reshape(c_out, 1)

    rows, cols = x_tiles.shape[2], x_tiles.shape[3]
    kernel = functools.partial(_conv1d_kernel, n_taps=n_taps, l_tile=l_tile)

    out = pl.pallas_call(
        kernel,
        out_shape=jax.ShapeDtypeStruct((n, c_out, l_out), x.dtype),
        grid_spec=pltpu.PrefetchScalarGridSpec(
            num_scalar_prefetch=0,
            grid=(n, t),
            in_specs=[
                pl.BlockSpec((1, 1, rows, cols), lambda i, j: (i, j, 0, 0)),
                pl.BlockSpec((c_out, k * c_in), lambda i, j: (0, 0)),
                pl.BlockSpec((c_out, 1), lambda i, j: (0, 0)),
            ],
            out_specs=pl.BlockSpec((1, c_out, l_tile), lambda i, j: (i, 0, j)),
        ),
        compiler_params=pltpu.CompilerParams(
            dimension_semantics=("parallel", "parallel"),
            vmem_limit_bytes=32 * 1024 * 1024,
        ),
    )(x_tiles, w2, b2)

    return out                                               # (N, C_out, L_out) NCL


if __name__ == "__main__":
    # Small shapes consistent with ConvLayer(in_channels=4, out_channels=8,
    # kernel_size=3, stride=1): x is (batch=2, C_in=4, L=16) NCL.
    key = jax.random.PRNGKey(0)
    kx, kw, kb = jax.random.split(key, 3)

    N, C_IN, C_OUT, L, K, STRIDE = 2, 4, 8, 16, 3, 1

    x = jax.random.normal(kx, (N, C_IN, L), dtype=jnp.float32)
    weight = jax.random.normal(kw, (C_OUT, C_IN, K), dtype=jnp.float32) * 0.1
    bias = jax.random.normal(kb, (C_OUT,), dtype=jnp.float32) * 0.1

    out = conv_layer_forward(x, weight, bias, stride=STRIDE)
    out = jax.block_until_ready(out)

    # Reference check against XLA conv (same semantics as torch Conv1d).
    pad = (K - 1) // 2
    ref = lax.conv_general_dilated(
        x, weight, window_strides=(STRIDE,), padding=[(pad, pad)],
        dimension_numbers=("NCH", "OIH", "NCH"))
    ref = ref + bias[None, :, None]
    ref = jnp.where(ref >= 0, ref, NEG_SLOPE * ref)

    assert out.shape == ref.shape, (out.shape, ref.shape)
    assert jnp.allclose(out, ref, atol=1e-4, rtol=1e-4), float(jnp.max(jnp.abs(out - ref)))

    print("KERNEL_OK")
</pallas_src>

<mosaic_0001>
module attributes {stable_mosaic.version = 11 : i64} {
  func.func @_conv1d_kernel(%arg0: i32, %arg1: i32, %arg2: memref<1x1x4x18xf32, #tpu.memory_space<vmem>>, %arg3: memref<8x12xf32, #tpu.memory_space<vmem>>, %arg4: memref<8x1xf32, #tpu.memory_space<vmem>>, %arg5: memref<1x8x16xf32, #tpu.memory_space<vmem>>) attributes {dimension_semantics = [#tpu.dimension_semantics<parallel>, #tpu.dimension_semantics<parallel>], iteration_bounds = array<i64: 2, 1>, scalar_prefetch = 0 : i64, scratch_operands = 0 : i64, tpu.core_type = #tpu.core_type<tc>, window_params = [{transform_indices = @transform_0, window_bounds = array<i64: 1, 1, 4, 18>}, {pipeline_mode = #tpu.pipeline_mode<synchronous>, transform_indices = @transform_1, window_bounds = array<i64: 8, 12>}, {pipeline_mode = #tpu.pipeline_mode<synchronous>, transform_indices = @transform_2, window_bounds = array<i64: 8, 1>}, {transform_indices = @transform_3, window_bounds = array<i64: 1, 8, 16>}]} {
    %c0 = arith.constant 0 : index
    %c0_0 = arith.constant 0 : index
    %c0_1 = arith.constant 0 : index
    %c0_2 = arith.constant 0 : index
    %0 = vector.load %arg2[%c0, %c0_0, %c0_1, %c0_2] : memref<1x1x4x18xf32, #tpu.memory_space<vmem>>, vector<1x1x4x18xf32>
    %1 = vector.shape_cast %0 : vector<1x1x4x18xf32> to vector<4x18xf32>
    %2 = vector.extract_strided_slice %1 {offsets = [0, 0], sizes = [4, 16], strides = [1, 1]} : vector<4x18xf32> to vector<4x16xf32>
    %3 = vector.extract_strided_slice %1 {offsets = [0, 1], sizes = [4, 16], strides = [1, 1]} : vector<4x18xf32> to vector<4x16xf32>
    %4 = vector.extract_strided_slice %1 {offsets = [0, 2], sizes = [4, 16], strides = [1, 1]} : vector<4x18xf32> to vector<4x16xf32>
    %5 = tpu.concatenate %2, %3, %4 in 0 : vector<4x16xf32>, vector<4x16xf32>, vector<4x16xf32> -> vector<12x16xf32>
    %c0_3 = arith.constant 0 : index
    %c0_4 = arith.constant 0 : index
    %6 = vector.load %arg3[%c0_3, %c0_4] : memref<8x12xf32, #tpu.memory_space<vmem>>, vector<8x12xf32>
    %cst = arith.constant dense<0.000000e+00> : vector<8x16xf32>
    %7 = tpu.matmul %6, %5, %cst {dimension_numbers = #tpu.dot_dimension_numbers<[1], [0], [0], [1], [0, 0, 1, 1], [], []>} : vector<8x12xf32>, vector<12x16xf32>, vector<8x16xf32> -> vector<8x16xf32>
    %c0_5 = arith.constant 0 : index
    %c0_6 = arith.constant 0 : index
    %8 = vector.load %arg4[%c0_5, %c0_6] : memref<8x1xf32, #tpu.memory_space<vmem>>, vector<8x1xf32>
    %9 = vector.broadcast %8 : vector<8x1xf32> to vector<8x16xf32>
    %10 = arith.addf %7, %9 : vector<8x16xf32>
    %cst_7 = arith.constant 0.000000e+00 : f32
    %11 = vector.broadcast %cst_7 : f32 to vector<8x16xf32>
    %12 = arith.cmpf oge, %10, %11 : vector<8x16xf32>
    %cst_8 = arith.constant 0.00999999977 : f32
    %13 = vector.broadcast %cst_8 : f32 to vector<8x16xf32>
    %14 = arith.mulf %13, %10 : vector<8x16xf32>
    %15 = arith.select %12, %10, %14 : vector<8x16xi1>, vector<8x16xf32>
    %c0_9 = arith.constant 0 : index
    %c0_10 = arith.constant 0 : index
    %c0_11 = arith.constant 0 : index
    %16 = vector.load %arg5[%c0_9, %c0_10, %c0_11] : memref<1x8x16xf32, #tpu.memory_space<vmem>>, vector<1x8x16xf32>
    %17 = vector.shape_cast %16 : vector<1x8x16xf32> to vector<8x16xf32>
    %18 = vector.shape_cast %15 : vector<8x16xf32> to vector<1x8x16xf32>
    tpu.vector_store %arg5[%c0_9, %c0_10, %c0_11], %18 {strides = array<i32>} : memref<1x8x16xf32, #tpu.memory_space<vmem>>, vector<1x8x16xf32>,
    return
  }
  func.func @transform_0(%arg0: i32, %arg1: i32) -> (i32, i32, i32, i32) {
    %c0_i32 = arith.constant 0 : i32
    %c0_i32_0 = arith.constant 0 : i32
    %c0_i32_1 = arith.constant 0 : i32
    return %arg0, %arg1, %c0_i32, %c0_i32_0 : i32, i32, i32, i32
  }
  func.func @transform_1(%arg0: i32, %arg1: i32) -> (i32, i32) {
    %c0_i32 = arith.constant 0 : i32
    %c0_i32_0 = arith.constant 0 : i32
    %c0_i32_1 = arith.constant 0 : i32
    return %c0_i32, %c0_i32_0 : i32, i32
  }
  func.func @transform_2(%arg0: i32, %arg1: i32) -> (i32, i32) {
    %c0_i32 = arith.constant 0 : i32
    %c0_i32_0 = arith.constant 0 : i32
    %c0_i32_1 = arith.constant 0 : i32
    return %c0_i32, %c0_i32_0 : i32, i32
  }
  func.func @transform_3(%arg0: i32, %arg1: i32) -> (i32, i32, i32) {
    %c0_i32 = arith.constant 0 : i32
    %c0_i32_0 = arith.constant 0 : i32
    return %arg0, %c0_i32, %arg1 : i32, i32, i32
  }
}

</mosaic_0001>

<bundles_post_ra>
// kernel: tpu_custom_call.1
= control target key start
LH: loop header
LB: loop body
LE: loop exit
PB: predicated region body
PF: predicated region fallthrough
CT: control target
= control target key end

     0   :  { %8 = vsyncpa [#allocation3], 0  ;;  %s762_s0 = inlined_call_operand.vmem [shape: f32[2,1,4,18], index: 0, kind: input, shape index: {}]   ;;  %s763_s1 = inlined_call_operand.hbm [shape: f32[8,12], index: 1, kind: input, shape index: {}]   ;;  %s764_s2 = inlined_call_operand.vmem [shape: f32[8,1], index: 2, kind: input, shape index: {}]   ;;  %s765_s3 = inlined_call_operand.hbm [shape: f32[2,8,16], index: 3, kind: output, shape index: {}]  }
   0x1   :  { %9 = vsyncpa [#allocation4], 0 }
   0x2   :  { %11 = vsyncpa [#allocation4 + $0x1], 0  ;;  %s633_s12 = smov 0   ;;  %s635_s13 = smov 0  }
   0x3   :  { %s637_s14 = smov 0   ;;  %s639_s15 = smov 0  }
   0x4   :  { %s641_s16 = smov 0   ;;  %s643_s17 = smov 0  }
   0x5 LB: > { %s400_s18 = sadd.s32 4294967295, %s604_s17   ;;  %s401_s19 = sadd.s32 4294967294, %s604_s17   ;;  %s604_s17 = sphi %s643_s17, %s17_s17   ;;  %s600_s16 = sphi %s641_s16, %s774_s16   ;;  %s596_s15 = sphi %s639_s15, %s773_s15   ;;  %s592_s14 = sphi %s637_s14, %s772_s14   ;;  %s588_s13 = sphi %s635_s13, %s771_s13   ;;  %s584_s12 = sphi %s633_s12, %s770_s12  }
   0x6   : > { %s29_s20 = sadd.s32 1, %s600_s16  ;;  %s108_s21 = sadd.s32 1, %s592_s14 }
   0x7   : > { %p31_p0 = scmp.ge.s32.totalorder %s29_s20, 2  ;;  %p118_p1 = scmp.ne.s32.totalorder %s592_s14, %s588_s13 }
   0x8   : > { %p119_p2 = scmp.eq.s32.totalorder %s400_s18, 1  ;;  %p124_p3 = scmp.ne.s32.totalorder %s588_s13, %s584_s12 }
   0x9   : > { %s776_s20 = smov (%p31_p0, %s29_s20), 0  ;;  %p125_p5 = scmp.eq.s32.totalorder %s401_s19, 1 }
   0xa   : > { %p673_p4 = por %p119_p2, %p118_p1  ;;  %s103_s23 = ssub.s32 %s600_s16, %s776_s20 }
   0xb   : > { %p402_p6 = scmp.ge.s32.totalorder %s604_s17, 1  ;;  %p106_p7 = scmp.eq.s32.totalorder %s103_s23, 0 }
   0xc   : > { %p680_p8 = por %p125_p5, %p124_p3  ;;  %p132_p9 = scmp.lt.s32.totalorder %s604_s17, 3 }
   0xd   : > { %s686_s25 = scalar_select %p106_p7, %s592_s14, %s108_s21  }
   0xe   : > { %p688_p10 = pnand %p402_p6, %p132_p9  ;;  %p692_p11 = scmp.eq.s32.totalorder %s400_s18, 0 }
   0xf   : > { %s606_s28 = smov [#allocation2]  }
  0x10   : > { %p431_p12 = pneg %p688_p10  ;;  %s145_s29 = sshll.u32 %s606_s28, 4  ;;  %s146_s29 = int_to_ptr.vmem [resolvable:$true] %s145_s29 }
  0x11   : > { %s509_s30 = scalar_lea.vmem %s146_s29, 128  ;;  %p517_p5 = scmp.lt.s32.totalorder %s146_s29, %s146_s29 }
  0x12   : > { %p432_p13 = pnand %p692_p11, %p431_p12  ;;  %p510_p1 = scmp.ne.s32.totalorder %s146_s29, %s509_s30 }
  0x13   : > { %p518_p6 = scmp.lt.s32.totalorder %s509_s30, %s509_s30 }
  0x14   : > { %p500_p0 = pneg %p432_p13 }
  0x15   : > { %p519_p7 = por %p518_p6, %p517_p5 }
  0x16   : > { %p512_p2 = pnand %p510_p1, %p500_p0 }
  0x18   : > { %p513_p3 = pneg %p512_p2 }
  0x1a   : > { %p520_p9 = pnand %p519_p7, %p513_p3 }
  0x1c   : > { %523 = shalt.err (!%p520_p9)
}
  0x1d   : > { %434 = dma.hbm_to_vmem [thread:$0]  (!%p432_p13), %s763_s1, 128, %s146_s29, [#allocation3]  }
  0x1e   : > { %171 = sbr.rel (%p688_p10) target bundleno = 375 (0x177), region = 32 }
  0x23   : > { %575 = dma.done.wait (%p692_p11), [#allocation3], 128  }
  0x24   : > { %577 = vsyncadd (%p692_p11), [#allocation3], 4294967168  ;;  %p197_p12 = scmp.lt.s32.totalorder %s596_s15, 1  ;;  %v607_v0 = vmov 0.0   ;;  %vm608_vm0 = vmmov 0   ;;  %v609_v1 = vmov 0  }
  0x25   : > { %418 = vmatprep.subr.mxu0 %v607_v0  ;;  %422 = vmatprep.mubr.msk.f32.mxu0 %vm608_vm0, %v607_v0  ;;  %v215_v3 = vld [vmem:[%s764_s2] sm:$0xff]  ;;  %s610_s19 = smov 126   ;;  %s611_s21 = smov 127   ;;  %vm212_vm1 = vcmask 1043456   ;;  %vm221_vm2 = vcmask 97280   ;;  %vm300_vm4 = vcmask 130048  }
  0x26   : > { %s198_s6 = scalar_select %p197_p12, %s596_s15, 1  ;;  %496 = vset.pattern.permute.xlu1 %v609_v1  ;;  %497 = vset.pattern.permute.xlu0 %v609_v1  ;;  %v214_v7 = vld [vmem:[#allocation2] sm:$0xff] }
  0x27   : > { %218 = vperm.xlu1 %496, %v215_v3   ;;  %s194_s23 = sand.u32 1, %s588_s13   ;;  %s412_s27 = sshll.u32 %s596_s15, 7 }
  0x28   : > { %s408_s7 = sshll.u32 %s198_s6, 2  ;;  %s407_s26 = sshll.u32 %s194_s23, 3 }
  0x29   : > { %s203_s10 = scalar_lea.vmem %s762_s0, %s408_s7  ;;  %s196_s28 = scalar_lea.vmem [#allocation5], %s407_s26 }
  0x2a   : > { %v204_v2 = vld [vmem:[%s203_s10] sm:$0xf]  ;;  %s317_s29 = sshll.u32 %s196_s28, 4  ;;  %s722_s5 = scalar_lea.hbm %s765_s3, %s412_s27  ;;  %s318_s29 = int_to_ptr.vmem [resolvable:$true] %s317_s29 }
  0x2b   : > { %210 = vrot.lane.b32.xlu0 %v204_v2, %s610_s19  ;;  %v206_v4 = vrot.slane %v204_v2, 4  ;;  %s303_s6 = scalar_lea.sflag [#allocation4], %s194_s23  ;;  %s524_s7 = scalar_lea.vmem %s318_s29, 128 }
  0x2c   : > { %p525_p10 = scmp.ne.s32.totalorder %s318_s29, %s524_s7  ;;  %s612_s15 = smov [#allocation5]  }
  0x2d   : > { %s528_s8 = sshll.u32 %s612_s15, 4  ;;  %s529_s8 = int_to_ptr.vmem [resolvable:$false] %s528_s8 }
  0x2e   : > { %p526_p11 = pnand %p525_p10, %p673_p4  ;;  %s530_s9 = scalar_lea.vmem %s529_s8, 256 }
  0x2f   : > { %207 = vrot.lane.b32.xlu0 %v206_v4, %s611_s21  ;;  %p531_p0 = scmp.lt.s32.totalorder %s318_s29, %s529_s8  ;;  %p532_p1 = scmp.lt.s32.totalorder %s530_s9, %s524_s7 }
  0x30   : > { %p527_p13 = pneg %p526_p11 }
  0x31   : > { %p533_p2 = por %p532_p1, %p531_p0 }
  0x33   : > { %p534_p3 = pnand %p533_p2, %p527_p13 }
  0x9d   : > { %v211_v5 = vpop.permute.xlu0 %210 }
  0x9e   : > { %419 = vmatpush3.msk.msra.mxu0 %vm212_vm1, %v211_v5 }
  0x9f   : > { %420 = vmatprep.subr.mxu0 %v607_v0 }
  0xa1   : > { %v208_v6 = vpop.permute.xlu0 %207 }
  0xa2   : > { %v213_v8 = vsel %vm212_vm1, %v204_v2, %v208_v6  ;;  %v219_v9 = vpop.permute.xlu1 %218 }
  0xa3   : > { %421 = vmatpush3.msra.mxu0 %v213_v8 }
  0xa4   : > { %423 = vmatmul.mubr.msk.f32.vlgmr.msra.gmra.mxu0 %vm221_vm2, %v214_v7 }
 0x164   : > { %v293_v10 = vpop.f32.mrf.mxu0 }
 0x165   : > { %v294_v11 = vadd.f32 %v293_v10, %v219_v9 }
 0x166   : > { %v424_v12 = vpop.f32.mrf.mxu0 }
 0x167   : > { %vm297_vm3 = vcmp.ge.f32.partialorder %v294_v11, 0.0  ;;  %v298_v13 = vmul.f32 0.01, %v294_v11 }
 0x169   : > { %v299_v14 = vsel %vm297_vm3, %v294_v11, %v298_v13 }
 0x16a   : > { %301 = vst.msk [vmem:[%s196_s28] sm:$0xff] %vm300_vm4, %v299_v14 }
 0x16b   : > { %537 = shalt.err (!%p534_p3)
}
 0x16c   : > { %s538_s10 = scalar_lea.hbm %s722_s5, 128  ;;  %s542_s19 = scalar_lea.hbm %s765_s3, 256 }
 0x16d   : > { %p539_p5 = scmp.ne.s32.totalorder %s722_s5, %s538_s10  ;;  %p543_p9 = scmp.lt.s32.totalorder %s722_s5, %s765_s3 }
 0x16e   : > { %p544_p12 = scmp.lt.s32.totalorder %s542_s19, %s538_s10 }
 0x16f   : > { %p540_p6 = pnand %p539_p5, %p673_p4 }
 0x170   : > { %p545_p10 = por %p544_p12, %p543_p9 }
 0x171   : > { %p541_p7 = pneg %p540_p6 }
 0x173   : > { %p546_p11 = pnand %p545_p10, %p541_p7 }
 0x175   : > { %549 = shalt.err (!%p546_p11)
}
 0x176   : > { %429 = dma.vmem_to_hbm [thread:$0]  (%p673_p4), %s318_s29, 128, %s722_s5, %s303_s6  }
 0x177 PF: > { %p441_p13 = scmp.ge.s32.totalorder %s604_s17, 2  ;;  %s329_s26 = sand.u32 1, %s584_s12  }
 0x178   : > { %s330_s27 = scalar_lea.sflag [#allocation4], %s329_s26 }
 0x179   : > { %p436_p0 = pnand %p441_p13, %p680_p8 }
 0x17b   : > { %p437_p1 = pneg %p436_p0 }
 0x17d   : > { %579 = dma.done.wait (%p437_p1), %s330_s27, 128  }
 0x17e   : > { %581 = vsyncadd (%p437_p1), %s330_s27, 4294967168  ;;  %s17_s17 = sadd.s32 1, %s604_s17   ;;  %s770_s12 = smov %s588_s13 }
 0x17f   : > { %p14_p2 = scmp.ge.s32.totalorder %s17_s17, 4   ;;  %s771_s13 = smov %s592_s14 }
 0x180   : > { %s772_s14 = smov %s686_s25  ;;  %s773_s15 = smov %s600_s16 }
 0x181   : > { %s774_s16 = smov %s776_s20  ;;  %16 = sbr.rel (!%p14_p2) target bundleno = 5 (0x5), region = 72 }
 0x186   :  { %335 = vsyncpa [#allocation3], 1 }
 0x187   :  { %337 = vsyncpa [#allocation3 + $0x1], 1 }
 0x188   :  { %338 = vsyncpa [#allocation4], 1 }
 0x189   :  { %340 = vsyncpa [#allocation4 + $0x1], 1 }

</bundles_post_ra>
